<compile_context>
chip_gen: v7x
topology: tpu7x:2x2x1
jax: 0.10.0
libtpu: 0.0.40
codegen_flags: <defaults>
</compile_context>

<pallas_src>
import jax
import jax.numpy as jnp
from jax.experimental import pallas as pl
from jax.experimental.pallas import tpu as pltpu

INPUT_SIZE = 2
HIDDEN_SIZE = 16
OUTPUT_SIZE = 1
NUM_LAYERS = 1
BATCH = 1
SEQ = 8

# Packed parameter slab layout (rows of a (P_ROWS, P_LANES) f32 array, hidden in lanes 0:16):
R_WIH = 0              # rows 0:2   = W_ih^T  (input, hidden)
R_WHH = 2              # rows 2:18  = W_hh^T  (hidden, hidden)
R_B = 18               # row 18     = b_ih + b_hh            (1, hidden)
R_WLIN = 19            # row 19     = linear weight row       (1, hidden)
R_BLIN = 20            # row 20,col0= linear bias scalar
P_ROWS = 24            # padded to a sublane multiple
P_LANES = 128          # lane-dense DMA


def rnn_net_kernel(x_ref, h0_ref, p_ref, out_ref, hN_ref, hbuf):
    # Static slices into the packed parameter slab (no extra DMAs).
    wih0 = p_ref[R_WIH:R_WIH + 1, 0:HIDDEN_SIZE]          # (1, hidden)
    wih1 = p_ref[R_WIH + 1:R_WIH + 2, 0:HIDDEN_SIZE]      # (1, hidden)
    whh = p_ref[R_WHH:R_WHH + HIDDEN_SIZE, 0:HIDDEN_SIZE]  # (hidden, hidden)
    b = p_ref[R_B:R_B + 1, 0:HIDDEN_SIZE]                  # (1, hidden)
    wlin = p_ref[R_WLIN:R_WLIN + 1, 0:HIDDEN_SIZE]         # (1, hidden)
    blin = p_ref[R_BLIN:R_BLIN + 1, 0:1]                   # (1, 1)

    x = x_ref[...]                                          # (seq, input)

    # Hoisted input projection for the whole sequence on the VPU (K=2 -> two broadcast FMAs).
    xw = x[:, 0:1] * wih0 + x[:, 1:2] * wih1 + b            # (seq, hidden)

    # Single-pass bf16 MXU recurrence (f32 accumulate); whh cast once, outside the loop.
    whh_bf = whh.astype(jnp.bfloat16)
    h = h0_ref[...]                                         # (1, hidden), f32, loop-carried

    # seq is a compile-time constant -> static unroll; per-step store to VMEM scratch
    # issues on the idle vst slot and hides under the next step's MXU/tanh latency.
    for t in range(SEQ):
        h = jnp.tanh(xw[t:t + 1, :]
                     + jnp.dot(h.astype(jnp.bfloat16), whh_bf,
                               preferred_element_type=jnp.float32))
        hbuf[t:t + 1, :] = h

    hN_ref[...] = h                                         # final hidden state

    # Linear head, hoisted out of the recurrence: VPU multiply + cross-lane reduce
    # (avoids an XLU transpose of H and an extra MXU pass).
    H = hbuf[...]                                           # (seq, hidden)
    y = jnp.sum(H * wlin, axis=1, keepdims=True) + blin     # (seq, 1)
    out_ref[...] = y


def pack_params(params):
    """One-time parameter preprocessing (call OUTSIDE the per-step jit):
    transpose, bias sum and packing into a single lane-dense f32 slab."""
    slab = jnp.zeros((P_ROWS, P_LANES), jnp.float32)
    slab = slab.at[R_WIH:R_WIH + INPUT_SIZE, 0:HIDDEN_SIZE].set(params["w_ih"].T)
    slab = slab.at[R_WHH:R_WHH + HIDDEN_SIZE, 0:HIDDEN_SIZE].set(params["w_hh"].T)
    slab = slab.at[R_B, 0:HIDDEN_SIZE].set(params["b_ih"] + params["b_hh"])
    slab = slab.at[R_WLIN, 0:HIDDEN_SIZE].set(params["w_lin"].reshape(-1))
    slab = slab.at[R_BLIN, 0].set(params["b_lin"][0])
    return slab


def net_forward(x, hidden_prev, packed_params):
    """Mirrors Net.forward:
       out, h = rnn(x, h0); out = linear(out.view(-1, hidden)); out = out.unsqueeze(0)"""
    batch, seq, _ = x.shape
    assert batch == 1 and NUM_LAYERS == 1

    x2d = x.reshape(seq, INPUT_SIZE).astype(jnp.float32)          # (seq, input)
    h0 = hidden_prev.reshape(1, HIDDEN_SIZE).astype(jnp.float32)  # (1, hidden)

    vmem = pl.BlockSpec(memory_space=pltpu.MemorySpace.VMEM)
    y_col, h_final = pl.pallas_call(
        rnn_net_kernel,
        out_shape=(
            jax.ShapeDtypeStruct((seq, OUTPUT_SIZE), jnp.float32),
            jax.ShapeDtypeStruct((1, HIDDEN_SIZE), jnp.float32),
        ),
        in_specs=[vmem, vmem, vmem],
        out_specs=(vmem, vmem),
        scratch_shapes=[pltpu.VMEM((SEQ, HIDDEN_SIZE), jnp.float32)],
    )(x2d, h0, packed_params)

    out = y_col.reshape(1, batch * seq, OUTPUT_SIZE)        # out.unsqueeze(0) layout
    h_out = h_final.reshape(NUM_LAYERS, batch, HIDDEN_SIZE)  # (num_layers, batch, hidden)
    return out, h_out


def init_params(key):
    """nn.RNN params ~ Normal(0, 0.001); nn.Linear default: U(-1/sqrt(fan_in), 1/sqrt(fan_in))."""
    k = jax.random.split(key, 6)
    std = 0.001
    bound = 1.0 / jnp.sqrt(HIDDEN_SIZE)
    return {
        "w_ih": std * jax.random.normal(k[0], (HIDDEN_SIZE, INPUT_SIZE), jnp.float32),
        "w_hh": std * jax.random.normal(k[1], (HIDDEN_SIZE, HIDDEN_SIZE), jnp.float32),
        "b_ih": std * jax.random.normal(k[2], (HIDDEN_SIZE,), jnp.float32),
        "b_hh": std * jax.random.normal(k[3], (HIDDEN_SIZE,), jnp.float32),
        "w_lin": jax.random.uniform(k[4], (OUTPUT_SIZE, HIDDEN_SIZE), jnp.float32, -bound, bound),
        "b_lin": jax.random.uniform(k[5], (OUTPUT_SIZE,), jnp.float32, -bound, bound),
    }


def net_forward_ref(x, hidden_prev, params):
    """Pure-JAX f32 reference of the same forward pass (for correctness check)."""
    h = hidden_prev.reshape(1, HIDDEN_SIZE)
    outs = []
    for t in range(x.shape[1]):
        x_t = x[:, t, :]  # (1, input)
        h = jnp.tanh(x_t @ params["w_ih"].T + params["b_ih"]
                     + h @ params["w_hh"].T + params["b_hh"])
        outs.append(h)
    rnn_out = jnp.stack(outs, axis=1).reshape(-1, HIDDEN_SIZE)
    lin = rnn_out @ params["w_lin"].T + params["b_lin"]
    return lin[None, :, :], h.reshape(NUM_LAYERS, 1, HIDDEN_SIZE)


if __name__ == "__main__":
    key = jax.random.PRNGKey(0)
    k_x, k_p = jax.random.split(key)

    x = jax.random.normal(k_x, (BATCH, SEQ, INPUT_SIZE), jnp.float32)
    hidden_prev = jnp.zeros((BATCH, NUM_LAYERS, HIDDEN_SIZE), jnp.float32)
    params = init_params(k_p)

    # One-time parameter packing, cached outside the per-call jit.
    packed = jax.block_until_ready(pack_params(params))

    fwd = jax.jit(net_forward)
    out, h_n = fwd(x, hidden_prev, packed)
    out = jax.block_until_ready(out)
    h_n = jax.block_until_ready(h_n)

    out_ref, h_ref = net_forward_ref(x, hidden_prev, params)
    assert out.shape == (1, BATCH * SEQ, OUTPUT_SIZE)
    assert h_n.shape == (NUM_LAYERS, BATCH, HIDDEN_SIZE)
    # Tolerance slightly loosened vs. a pure-f32 reference: the recurrence matmul runs as a
    # single bf16 MXU pass (weights ~1e-3, tanh-bounded h -> abs error ~1e-6).
    assert jnp.allclose(out, out_ref, atol=5e-5), "output mismatch vs reference"
    assert jnp.allclose(h_n, h_ref, atol=5e-5), "hidden mismatch vs reference"

    print("KERNEL_OK")
</pallas_src>

<mosaic_0001>
module attributes {stable_mosaic.version = 11 : i64} {
  func.func @rnn_net_kernel(%arg0: memref<8x2xf32, #tpu.memory_space<vmem>>, %arg1: memref<1x16xf32, #tpu.memory_space<vmem>>, %arg2: memref<24x128xf32, #tpu.memory_space<vmem>>, %arg3: memref<8x1xf32, #tpu.memory_space<vmem>>, %arg4: memref<1x16xf32, #tpu.memory_space<vmem>>, %arg5: memref<8x16xf32, #tpu.memory_space<vmem>>) attributes {dimension_semantics = [], scalar_prefetch = 0 : i64, scratch_operands = 1 : i64, tpu.core_type = #tpu.core_type<tc>} {
    %c0 = arith.constant 0 : index
    %c0_0 = arith.constant 0 : index
    %0 = vector.load %arg2[%c0, %c0_0] : memref<24x128xf32, #tpu.memory_space<vmem>>, vector<1x16xf32>
    %c1 = arith.constant 1 : index
    %c0_1 = arith.constant 0 : index
    %1 = vector.load %arg2[%c1, %c0_1] : memref<24x128xf32, #tpu.memory_space<vmem>>, vector<1x16xf32>
    %c2 = arith.constant 2 : index
    %c0_2 = arith.constant 0 : index
    %2 = vector.load %arg2[%c2, %c0_2] : memref<24x128xf32, #tpu.memory_space<vmem>>, vector<16x16xf32>
    %c18 = arith.constant 18 : index
    %c0_3 = arith.constant 0 : index
    %3 = vector.load %arg2[%c18, %c0_3] : memref<24x128xf32, #tpu.memory_space<vmem>>, vector<1x16xf32>
    %c19 = arith.constant 19 : index
    %c0_4 = arith.constant 0 : index
    %4 = vector.load %arg2[%c19, %c0_4] : memref<24x128xf32, #tpu.memory_space<vmem>>, vector<1x16xf32>
    %c20 = arith.constant 20 : index
    %c0_5 = arith.constant 0 : index
    %5 = vector.load %arg2[%c20, %c0_5] : memref<24x128xf32, #tpu.memory_space<vmem>>, vector<1x1xf32>
    %c0_6 = arith.constant 0 : index
    %c0_7 = arith.constant 0 : index
    %6 = vector.load %arg0[%c0_6, %c0_7] : memref<8x2xf32, #tpu.memory_space<vmem>>, vector<8x2xf32>
    %7 = vector.extract_strided_slice %6 {offsets = [0, 0], sizes = [8, 1], strides = [1, 1]} : vector<8x2xf32> to vector<8x1xf32>
    %8 = vector.broadcast %7 : vector<8x1xf32> to vector<8x16xf32>
    %9 = vector.broadcast %0 : vector<1x16xf32> to vector<8x16xf32>
    %10 = arith.mulf %8, %9 : vector<8x16xf32>
    %11 = vector.extract_strided_slice %6 {offsets = [0, 1], sizes = [8, 1], strides = [1, 1]} : vector<8x2xf32> to vector<8x1xf32>
    %12 = vector.broadcast %11 : vector<8x1xf32> to vector<8x16xf32>
    %13 = vector.broadcast %1 : vector<1x16xf32> to vector<8x16xf32>
    %14 = arith.mulf %12, %13 : vector<8x16xf32>
    %15 = arith.addf %10, %14 : vector<8x16xf32>
    %16 = vector.broadcast %3 : vector<1x16xf32> to vector<8x16xf32>
    %17 = arith.addf %15, %16 : vector<8x16xf32>
    %18 = arith.truncf %2 : vector<16x16xf32> to vector<16x16xbf16>
    %c0_8 = arith.constant 0 : index
    %c0_9 = arith.constant 0 : index
    %19 = vector.load %arg1[%c0_8, %c0_9] : memref<1x16xf32, #tpu.memory_space<vmem>>, vector<1x16xf32>
    %20 = vector.extract_strided_slice %17 {offsets = [0, 0], sizes = [1, 16], strides = [1, 1]} : vector<8x16xf32> to vector<1x16xf32>
    %21 = arith.truncf %19 : vector<1x16xf32> to vector<1x16xbf16>
    %cst = arith.constant dense<0.000000e+00> : vector<1x16xf32>
    %22 = tpu.matmul %21, %18, %cst {dimension_numbers = #tpu.dot_dimension_numbers<[1], [0], [0], [1], [0, 0, 1, 1], [], []>} : vector<1x16xbf16>, vector<16x16xbf16>, vector<1x16xf32> -> vector<1x16xf32>
    %23 = arith.addf %20, %22 : vector<1x16xf32>
    %24 = math.tanh %23 : vector<1x16xf32>
    %c0_10 = arith.constant 0 : index
    %c0_11 = arith.constant 0 : index
    %25 = vector.load %arg5[%c0_10, %c0_11] : memref<8x16xf32, #tpu.memory_space<vmem>>, vector<1x16xf32>
    tpu.vector_store %arg5[%c0_10, %c0_11], %24 {strides = array<i32>} : memref<8x16xf32, #tpu.memory_space<vmem>>, vector<1x16xf32>,
    %26 = vector.extract_strided_slice %17 {offsets = [1, 0], sizes = [1, 16], strides = [1, 1]} : vector<8x16xf32> to vector<1x16xf32>
    %27 = arith.truncf %24 : vector<1x16xf32> to vector<1x16xbf16>
    %cst_12 = arith.constant dense<0.000000e+00> : vector<1x16xf32>
    %28 = tpu.matmul %27, %18, %cst_12 {dimension_numbers = #tpu.dot_dimension_numbers<[1], [0], [0], [1], [0, 0, 1, 1], [], []>} : vector<1x16xbf16>, vector<16x16xbf16>, vector<1x16xf32> -> vector<1x16xf32>
    %29 = arith.addf %26, %28 : vector<1x16xf32>
    %30 = math.tanh %29 : vector<1x16xf32>
    %c1_13 = arith.constant 1 : index
    %c0_14 = arith.constant 0 : index
    %31 = vector.load %arg5[%c1_13, %c0_14] : memref<8x16xf32, #tpu.memory_space<vmem>>, vector<1x16xf32>
    tpu.vector_store %arg5[%c1_13, %c0_14], %30 {strides = array<i32>} : memref<8x16xf32, #tpu.memory_space<vmem>>, vector<1x16xf32>,
    %32 = vector.extract_strided_slice %17 {offsets = [2, 0], sizes = [1, 16], strides = [1, 1]} : vector<8x16xf32> to vector<1x16xf32>
    %33 = arith.truncf %30 : vector<1x16xf32> to vector<1x16xbf16>
    %cst_15 = arith.constant dense<0.000000e+00> : vector<1x16xf32>
    %34 = tpu.matmul %33, %18, %cst_15 {dimension_numbers = #tpu.dot_dimension_numbers<[1], [0], [0], [1], [0, 0, 1, 1], [], []>} : vector<1x16xbf16>, vector<16x16xbf16>, vector<1x16xf32> -> vector<1x16xf32>
    %35 = arith.addf %32, %34 : vector<1x16xf32>
    %36 = math.tanh %35 : vector<1x16xf32>
    %c2_16 = arith.constant 2 : index
    %c0_17 = arith.constant 0 : index
    %37 = vector.load %arg5[%c2_16, %c0_17] : memref<8x16xf32, #tpu.memory_space<vmem>>, vector<1x16xf32>
    tpu.vector_store %arg5[%c2_16, %c0_17], %36 {strides = array<i32>} : memref<8x16xf32, #tpu.memory_space<vmem>>, vector<1x16xf32>,
    %38 = vector.extract_strided_slice %17 {offsets = [3, 0], sizes = [1, 16], strides = [1, 1]} : vector<8x16xf32> to vector<1x16xf32>
    %39 = arith.truncf %36 : vector<1x16xf32> to vector<1x16xbf16>
    %cst_18 = arith.constant dense<0.000000e+00> : vector<1x16xf32>
    %40 = tpu.matmul %39, %18, %cst_18 {dimension_numbers = #tpu.dot_dimension_numbers<[1], [0], [0], [1], [0, 0, 1, 1], [], []>} : vector<1x16xbf16>, vector<16x16xbf16>, vector<1x16xf32> -> vector<1x16xf32>
    %41 = arith.addf %38, %40 : vector<1x16xf32>
    %42 = math.tanh %41 : vector<1x16xf32>
    %c3 = arith.constant 3 : index
    %c0_19 = arith.constant 0 : index
    %43 = vector.load %arg5[%c3, %c0_19] : memref<8x16xf32, #tpu.memory_space<vmem>>, vector<1x16xf32>
    tpu.vector_store %arg5[%c3, %c0_19], %42 {strides = array<i32>} : memref<8x16xf32, #tpu.memory_space<vmem>>, vector<1x16xf32>,
    %44 = vector.extract_strided_slice %17 {offsets = [4, 0], sizes = [1, 16], strides = [1, 1]} : vector<8x16xf32> to vector<1x16xf32>
    %45 = arith.truncf %42 : vector<1x16xf32> to vector<1x16xbf16>
    %cst_20 = arith.constant dense<0.000000e+00> : vector<1x16xf32>
    %46 = tpu.matmul %45, %18, %cst_20 {dimension_numbers = #tpu.dot_dimension_numbers<[1], [0], [0], [1], [0, 0, 1, 1], [], []>} : vector<1x16xbf16>, vector<16x16xbf16>, vector<1x16xf32> -> vector<1x16xf32>
    %47 = arith.addf %44, %46 : vector<1x16xf32>
    %48 = math.tanh %47 : vector<1x16xf32>
    %c4 = arith.constant 4 : index
    %c0_21 = arith.constant 0 : index
    %49 = vector.load %arg5[%c4, %c0_21] : memref<8x16xf32, #tpu.memory_space<vmem>>, vector<1x16xf32>
    tpu.vector_store %arg5[%c4, %c0_21], %48 {strides = array<i32>} : memref<8x16xf32, #tpu.memory_space<vmem>>, vector<1x16xf32>,
    %50 = vector.extract_strided_slice %17 {offsets = [5, 0], sizes = [1, 16], strides = [1, 1]} : vector<8x16xf32> to vector<1x16xf32>
    %51 = arith.truncf %48 : vector<1x16xf32> to vector<1x16xbf16>
    %cst_22 = arith.constant dense<0.000000e+00> : vector<1x16xf32>
    %52 = tpu.matmul %51, %18, %cst_22 {dimension_numbers = #tpu.dot_dimension_numbers<[1], [0], [0], [1], [0, 0, 1, 1], [], []>} : vector<1x16xbf16>, vector<16x16xbf16>, vector<1x16xf32> -> vector<1x16xf32>
    %53 = arith.addf %50, %52 : vector<1x16xf32>
    %54 = math.tanh %53 : vector<1x16xf32>
    %c5 = arith.constant 5 : index
    %c0_23 = arith.constant 0 : index
    %55 = vector.load %arg5[%c5, %c0_23] : memref<8x16xf32, #tpu.memory_space<vmem>>, vector<1x16xf32>
    tpu.vector_store %arg5[%c5, %c0_23], %54 {strides = array<i32>} : memref<8x16xf32, #tpu.memory_space<vmem>>, vector<1x16xf32>,
    %56 = vector.extract_strided_slice %17 {offsets = [6, 0], sizes = [1, 16], strides = [1, 1]} : vector<8x16xf32> to vector<1x16xf32>
    %57 = arith.truncf %54 : vector<1x16xf32> to vector<1x16xbf16>
    %cst_24 = arith.constant dense<0.000000e+00> : vector<1x16xf32>
    %58 = tpu.matmul %57, %18, %cst_24 {dimension_numbers = #tpu.dot_dimension_numbers<[1], [0], [0], [1], [0, 0, 1, 1], [], []>} : vector<1x16xbf16>, vector<16x16xbf16>, vector<1x16xf32> -> vector<1x16xf32>
    %59 = arith.addf %56, %58 : vector<1x16xf32>
    %60 = math.tanh %59 : vector<1x16xf32>
    %c6 = arith.constant 6 : index
    %c0_25 = arith.constant 0 : index
    %61 = vector.load %arg5[%c6, %c0_25] : memref<8x16xf32, #tpu.memory_space<vmem>>, vector<1x16xf32>
    tpu.vector_store %arg5[%c6, %c0_25], %60 {strides = array<i32>} : memref<8x16xf32, #tpu.memory_space<vmem>>, vector<1x16xf32>,
    %62 = vector.extract_strided_slice %17 {offsets = [7, 0], sizes = [1, 16], strides = [1, 1]} : vector<8x16xf32> to vector<1x16xf32>
    %63 = arith.truncf %60 : vector<1x16xf32> to vector<1x16xbf16>
    %cst_26 = arith.constant dense<0.000000e+00> : vector<1x16xf32>
    %64 = tpu.matmul %63, %18, %cst_26 {dimension_numbers = #tpu.dot_dimension_numbers<[1], [0], [0], [1], [0, 0, 1, 1], [], []>} : vector<1x16xbf16>, vector<16x16xbf16>, vector<1x16xf32> -> vector<1x16xf32>
    %65 = arith.addf %62, %64 : vector<1x16xf32>
    %66 = math.tanh %65 : vector<1x16xf32>
    %c7 = arith.constant 7 : index
    %c0_27 = arith.constant 0 : index
    %67 = vector.load %arg5[%c7, %c0_27] : memref<8x16xf32, #tpu.memory_space<vmem>>, vector<1x16xf32>
    tpu.vector_store %arg5[%c7, %c0_27], %66 {strides = array<i32>} : memref<8x16xf32, #tpu.memory_space<vmem>>, vector<1x16xf32>,
    %c0_28 = arith.constant 0 : index
    %c0_29 = arith.constant 0 : index
    %68 = vector.load %arg4[%c0_28, %c0_29] : memref<1x16xf32, #tpu.memory_space<vmem>>, vector<1x16xf32>
    tpu.vector_store %arg4[%c0_28, %c0_29], %66 {strides = array<i32>} : memref<1x16xf32, #tpu.memory_space<vmem>>, vector<1x16xf32>,
    %c0_30 = arith.constant 0 : index
    %c0_31 = arith.constant 0 : index
    %69 = vector.load %arg5[%c0_30, %c0_31] : memref<8x16xf32, #tpu.memory_space<vmem>>, vector<8x16xf32>
    %70 = vector.broadcast %4 : vector<1x16xf32> to vector<8x16xf32>
    %71 = arith.mulf %69, %70 : vector<8x16xf32>
    %cst_32 = arith.constant dense<0.000000e+00> : vector<8xf32>
    %72 = vector.multi_reduction <add>, %71, %cst_32 [1] : vector<8x16xf32> to vector<8xf32>
    %73 = vector.shape_cast %72 : vector<8xf32> to vector<8x1xf32>
    %74 = vector.broadcast %5 : vector<1x1xf32> to vector<8x1xf32>
    %75 = arith.addf %73, %74 : vector<8x1xf32>
    %c0_33 = arith.constant 0 : index
    %c0_34 = arith.constant 0 : index
    %76 = vector.load %arg3[%c0_33, %c0_34] : memref<8x1xf32, #tpu.memory_space<vmem>>, vector<8x1xf32>
    tpu.vector_store %arg3[%c0_33, %c0_34], %75 {strides = array<i32>} : memref<8x1xf32, #tpu.memory_space<vmem>>, vector<8x1xf32>,
    return
  }
}

</mosaic_0001>

<bundles_post_ra>
// kernel: net_forward.1
= control target key start
LH: loop header
LB: loop body
LE: loop exit
PB: predicated region body
PF: predicated region fallthrough
CT: control target
= control target key end

     0   :  { %v635_v3 = vmov 0.0   ;;  %vm636_vm0 = vmmov 0   ;;  %s760_s0 = inlined_call_operand.vmem [shape: f32[8,2], index: 0, kind: input, shape index: {}]   ;;  %s761_s1 = inlined_call_operand.vmem [shape: f32[1,16], index: 1, kind: input, shape index: {}]   ;;  %s762_s2 = inlined_call_operand.vmem [shape: f32[24,128], index: 2, kind: input, shape index: {}]   ;;  %s763_s3 = inlined_call_operand.vmem [shape: f32[8,1], index: 3, kind: output, shape index: {0}]   ;;  %s764_s4 = inlined_call_operand.hbm [shape: f32[1,16], index: 4, kind: output, shape index: {1}]  }
   0x1   :  { %v20_v0 = vld [vmem:[%s762_s2 + $0x2] sm:$0xff]  ;;  %v21_v1 = vld [vmem:[%s762_s2 + $0xa] sm:$0xff]  ;;  %v52_v2 = vld [vmem:[%s761_s1] sm:$0x1]  ;;  %540 = vmatprep.subr.bf16.mxu0 %v635_v3  ;;  %542 = vmatprep.mubr.msk.bf16.mxu0 %vm636_vm0, %v635_v3 }
   0x2   :  { %v675_v4 = vpack.c.bf16 %v21_v1, %v20_v0  ;;  %v25_v5 = vld [vmem:[%s760_s0] sm:$0xff] }
   0x3   :  { %10 = vsyncpa [#allocation4], 0  ;;  %v53_v6 = vpack.c.bf16 %v52_v2, %v52_v2  ;;  %v637_v7 = vmov 0   ;;  %546 = vmatprep.subr.bf16.mxu1 %v635_v3  ;;  %vm54_vm1 = vcmask 130048   ;;  %548 = vmatprep.mubr.msk.bf16.mxu1 %vm636_vm0, %v635_v3  ;;  %v638_v8 = vmov 1   ;;  %s639_s29 = smov [#allocation3]  }
   0x4   :  { %593 = vset.pattern.permute.xlu0 %v637_v7  ;;  %541 = vmatpush3.bf16.msra.mxu0 %v675_v4  ;;  %v511_v10 = vld [vmem:[%s762_s2] ss:$0 sm:$0xff]  ;;  %v512_v12 = vld [vmem:[%s762_s2 + $0x1] ss:$0 sm:$0xff]  ;;  %v513_v16 = vld [vmem:[%s762_s2 + $0x12] ss:$0 sm:$0xff] }
   0x5   :  { %28 = vperm.xlu0 %593, %v25_v5   ;;  %547 = vmatpush3.bf16.msra.mxu1 %v675_v4  ;;  %vm100_vm2 = vcmask 122880   ;;  %vm151_vm3 = vcmask 123905   ;;  %vm205_vm4 = vcmask 124930   ;;  %vm258_vm5 = vcmask 125955   ;;  %s501_s30 = sshll.u32 %s639_s29, 4  ;;  %s502_s30 = int_to_ptr.vmem [resolvable:$true] %s501_s30 }
   0x6   :  { %552 = vmatprep.subr.bf16.mxu0 %v635_v3  ;;  %558 = vmatprep.subr.bf16.mxu1 %v635_v3  ;;  %vm313_vm6 = vcmask 126980   ;;  %vm366_vm7 = vcmask 128005   ;;  %vm421_vm8 = vcmask 129030   ;;  %vm474_vm9 = vcmask 130055   ;;  %s611_s5 = scalar_lea.vmem %s502_s30, 16  ;;  %s615_s6 = scalar_lea.vmem %s502_s30, 32 }
   0x7   :  { %543 = vmatmul.mubr.msk.bf16.vlgmr.msra.gmra.mrb[0].mxu0 %vm54_vm1, %v53_v6  ;;  %p612_p0 = scmp.ne.s32.totalorder %s502_s30, %s611_s5  ;;  %p616_p1 = scmp.lt.s32.totalorder %s502_s30, %s502_s30 }
   0x8   :  { %553 = vmatpush3.bf16.msra.mxu0 %v675_v4  ;;  %554 = vmatprep.mubr.msk.bf16.mxu0 %vm636_vm0, %v635_v3  ;;  %p617_p2 = scmp.lt.s32.totalorder %s615_s6, %s611_s5 }
   0x9   :  { %594 = vset.pattern.permute.xlu0 %v638_v8  ;;  %564 = vmatprep.subr.bf16.mxu0 %v635_v3 }
   0xa   :  { %37 = vperm.xlu0 %594, %v25_v5   ;;  %p618_p3 = por %p617_p2, %p616_p1 }
   0xc   :  { %p619_p4 = pnand %p618_p3, %p612_p0 }
  0x84   :  { %v29_v9 = vpop.permute.xlu0 %28 }
  0x85   :  { %v35_v13 = vmul.f32 %v511_v10, %v29_v9 }
  0x89   :  { %v38_v11 = vpop.permute.xlu0 %37 }
  0x8a   :  { %v44_v14 = vmul.f32 %v512_v12, %v38_v11 }
  0x8c   :  { %v45_v15 = vadd.f32 %v44_v14, %v35_v13 }
  0x8e   :  { %v703_v17 = vadd.f32 %v513_v16, %v45_v15 }
  0xda   :  { %v92_v18 = vpop.f32.mrb[0].mxu0 }
  0xdb   :  { %v98_v19 = vadd.f32 %v92_v18, %v703_v17  ;;  %v544_v20 = vpop.f32.mrb[1].mxu0 }
  0xdc   :  { %v95_v21 = vpop.f32.mrb[2].mxu0 }
  0xdd   :  { %595 = vtanh.f32 %v98_v19  ;;  %v545_v22 = vpop.f32.mrb[3].mxu0 }
  0xe7   :  { %v596_v23 = vpop.eup %595 }
  0xe8   :  { %101 = vst.msk [vmem:[#allocation2] sm:$0x1] %vm100_vm2, %v596_v23  ;;  %v102_v24 = vpack.c.bf16 %v596_v23, %v596_v23 }
  0xea   :  { %549 = vmatmul.mubr.msk.bf16.vlgmr.msra.gmra.mrb[0].mxu1 %vm54_vm1, %v102_v24 }
  0xeb   :  { %559 = vmatpush3.bf16.msra.mxu1 %v675_v4  ;;  %560 = vmatprep.mubr.msk.bf16.mxu1 %vm636_vm0, %v635_v3 }
  0xec   :  { %570 = vmatprep.subr.bf16.mxu1 %v635_v3 }
 0x1bd   :  { %v140_v25 = vpop.f32.mrb[0].mxu1 }
 0x1be   :  { %v147_v26 = vrot.slane %v140_v25, 7  ;;  %v550_v27 = vpop.f32.mrb[1].mxu1  ;;  %v522_v25 = vld [vmem:[%s762_s2 + $0x13] ss:$0 sm:$0xff] }
 0x1bf   :  { %v143_v28 = vpop.f32.mrb[2].mxu1 }
 0x1c0   :  { %v149_v29 = vadd.f32 %v147_v26, %v703_v17  ;;  %v551_v30 = vpop.f32.mrb[3].mxu1 }
 0x1c2   :  { %597 = vtanh.f32 %v149_v29 }
 0x1cc   :  { %v598_v31 = vpop.eup %597 }
 0x1cd   :  { %152 = vst.msk [vmem:[#allocation2] sm:$0x2] %vm151_vm3, %v598_v31  ;;  %v153_v32 = vpack.c.bf16 %v598_v31, %v598_v31 }
 0x1cf   :  { %v155_v33 = vshrl.u32 %v153_v32, 16 }
 0x1d1   :  { %555 = vmatmul.mubr.msk.bf16.vlgmr.msra.gmra.mrb[4].mxu0 %vm54_vm1, %v155_v33 }
 0x1d2   :  { %565 = vmatpush3.bf16.msra.mxu0 %v675_v4  ;;  %566 = vmatprep.mubr.msk.bf16.mxu0 %vm636_vm0, %v635_v3 }
 0x1d3   :  { %576 = vmatprep.subr.bf16.mxu0 %v635_v3 }
 0x2a4   :  { %v194_v34 = vpop.f32.mrb[4].mxu0 }
 0x2a5   :  { %v201_v35 = vrot.slane %v194_v34, 6  ;;  %v556_v36 = vpop.f32.mrb[5].mxu0 }
 0x2a6   :  { %v197_v37 = vpop.f32.mrb[6].mxu0 }
 0x2a7   :  { %v203_v38 = vadd.f32 %v201_v35, %v703_v17  ;;  %v557_v39 = vpop.f32.mrb[7].mxu0 }
 0x2a9   :  { %599 = vtanh.f32 %v203_v38 }
 0x2b3   :  { %v600_v40 = vpop.eup %599 }
 0x2b4   :  { %206 = vst.msk [vmem:[#allocation2] sm:$0x4] %vm205_vm4, %v600_v40  ;;  %v207_v41 = vpack.c.bf16 %v600_v40, %v600_v40 }
 0x2b6   :  { %v209_v42 = vrot.slane %v207_v41, 1 }
 0x2b8   :  { %561 = vmatmul.mubr.msk.bf16.vlgmr.msra.gmra.mrb[4].mxu1 %vm54_vm1, %v209_v42 }
 0x2b9   :  { %571 = vmatpush3.bf16.msra.mxu1 %v675_v4  ;;  %572 = vmatprep.mubr.msk.bf16.mxu1 %vm636_vm0, %v635_v3 }
 0x2ba   :  { %582 = vmatprep.subr.bf16.mxu1 %v635_v3 }
 0x38b   :  { %v247_v43 = vpop.f32.mrb[4].mxu1 }
 0x38c   :  { %v254_v44 = vrot.slane %v247_v43, 5  ;;  %v562_v45 = vpop.f32.mrb[5].mxu1 }
 0x38d   :  { %v250_v46 = vpop.f32.mrb[6].mxu1 }
 0x38e   :  { %v256_v47 = vadd.f32 %v254_v44, %v703_v17  ;;  %v563_v48 = vpop.f32.mrb[7].mxu1 }
 0x390   :  { %601 = vtanh.f32 %v256_v47 }
 0x39a   :  { %v602_v49 = vpop.eup %601 }
 0x39b   :  { %259 = vst.msk [vmem:[#allocation2] sm:$0x8] %vm258_vm5, %v602_v49  ;;  %v260_v50 = vpack.c.bf16 %v602_v49, %v602_v49 }
 0x39d   :  { %v262_v51 = vshrl.u32 %v260_v50, 16 }
 0x39f   :  { %v264_v52 = vrot.slane %v262_v51, 1 }
 0x3a1   :  { %567 = vmatmul.mubr.msk.bf16.vlgmr.msra.gmra.mrb[8].mxu0 %vm54_vm1, %v264_v52 }
 0x3a2   :  { %577 = vmatpush3.bf16.msra.mxu0 %v675_v4  ;;  %578 = vmatprep.mubr.msk.bf16.mxu0 %vm636_vm0, %v635_v3 }
 0x474   :  { %v302_v53 = vpop.f32.mrb[8].mxu0 }
 0x475   :  { %v309_v54 = vrot.slane %v302_v53, 4  ;;  %v568_v55 = vpop.f32.mrb[9].mxu0 }
 0x476   :  { %v305_v56 = vpop.f32.mrb[10].mxu0 }
 0x477   :  { %v311_v57 = vadd.f32 %v309_v54, %v703_v17  ;;  %v569_v58 = vpop.f32.mrb[11].mxu0 }
 0x479   :  { %603 = vtanh.f32 %v311_v57 }
 0x483   :  { %v604_v59 = vpop.eup %603 }
 0x484   :  { %314 = vst.msk [vmem:[#allocation2] sm:$0x10] %vm313_vm6, %v604_v59  ;;  %v315_v60 = vpack.c.bf16 %v604_v59, %v604_v59 }
 0x486   :  { %v317_v61 = vrot.slane %v315_v60, 2 }
 0x488   :  { %573 = vmatmul.mubr.msk.bf16.vlgmr.msra.gmra.mrb[8].mxu1 %vm54_vm1, %v317_v61 }
 0x489   :  { %583 = vmatpush3.bf16.msra.mxu1 %v675_v4  ;;  %584 = vmatprep.mubr.msk.bf16.mxu1 %vm636_vm0, %v635_v3 }
 0x55b   :  { %v355_v62 = vpop.f32.mrb[8].mxu1 }
 0x55c   :  { %v362_v63 = vrot.slane %v355_v62, 3  ;;  %v574_v0 = vpop.f32.mrb[9].mxu1 }
 0x55d   :  { %v358_v1 = vpop.f32.mrb[10].mxu1 }
 0x55e   :  { %v364_v2 = vadd.f32 %v362_v63, %v703_v17  ;;  %v575_v5 = vpop.f32.mrb[11].mxu1 }
 0x560   :  { %605 = vtanh.f32 %v364_v2 }
 0x56a   :  { %v606_v6 = vpop.eup %605 }
 0x56b   :  { %367 = vst.msk [vmem:[#allocation2] sm:$0x20] %vm366_vm7, %v606_v6  ;;  %v368_v7 = vpack.c.bf16 %v606_v6, %v606_v6 }
 0x56d   :  { %v370_v8 = vshrl.u32 %v368_v7, 16 }
 0x56f   :  { %v372_v9 = vrot.slane %v370_v8, 2 }
 0x571   :  { %579 = vmatmul.mubr.msk.bf16.vlgmr.msra.gmra.mrb[12].mxu0 %vm54_vm1, %v372_v9 }
 0x644   :  { %v410_v4 = vpop.f32.mrb[12].mxu0 }
 0x645   :  { %v417_v10 = vrot.slane %v410_v4, 2  ;;  %v580_v11 = vpop.f32.mrb[13].mxu0 }
 0x646   :  { %v413_v3 = vpop.f32.mrb[14].mxu0 }
 0x647   :  { %v419_v12 = vadd.f32 %v417_v10, %v703_v17  ;;  %v581_v13 = vpop.f32.mrb[15].mxu0 }
 0x649   :  { %607 = vtanh.f32 %v419_v12 }
 0x653   :  { %v608_v14 = vpop.eup %607 }
 0x654   :  { %422 = vst.msk [vmem:[#allocation2] sm:$0x40] %vm421_vm8, %v608_v14  ;;  %v423_v15 = vpack.c.bf16 %v608_v14, %v608_v14 }
 0x656   :  { %v425_v16 = vrot.slane %v423_v15, 3 }
 0x658   :  { %585 = vmatmul.mubr.msk.bf16.vlgmr.msra.gmra.mrb[12].mxu1 %vm54_vm1, %v425_v16 }
 0x72b   :  { %v463_v18 = vpop.f32.mrb[12].mxu1 }
 0x72c   :  { %v470_v19 = vrot.slane %v463_v18, 1  ;;  %v586_v20 = vpop.f32.mrb[13].mxu1 }
 0x72d   :  { %v466_v21 = vpop.f32.mrb[14].mxu1 }
 0x72e   :  { %v472_v22 = vadd.f32 %v470_v19, %v703_v17  ;;  %v587_v23 = vpop.f32.mrb[15].mxu1 }
 0x730   :  { %609 = vtanh.f32 %v472_v22 }
 0x73a   :  { %v610_v24 = vpop.eup %609 }
 0x73b   :  { %475 = vst.msk [vmem:[#allocation2] sm:$0x80] %vm474_vm9, %v610_v24  ;;  %476 = vst.msk [vmem:[#allocation3 - $0x7] sm:$0x80] %vm474_vm9, %v610_v24 }
 0x742   :  { %v477_v26 = vld [vmem:[#allocation2] sm:$0xff] }
 0x743   :  { %v482_v27 = vmul.f32 %v522_v25, %v477_v26 }
 0x745   :  { %v483_v28 = vsel %vm54_vm1, %v482_v27, 0.0 }
 0x746   :  { %484 = vadd.xlane.f32.xlu1 %v483_v28 }
 0x747   :  { %622 = shalt.err (!%p619_p4)
}
 0x748   :  { %s623_s9 = scalar_lea.hbm %s764_s4, 16 }
 0x749   :  { %p624_p5 = scmp.ne.s32.totalorder %s764_s4, %s623_s9  ;;  %p627_p6 = scmp.lt.u32.totalorder %s623_s9, %s764_s4 }
 0x74b   :  { %p629_p7 = pnand %p627_p6, %p624_p5 }
 0x74d   :  { %632 = shalt.err (!%p629_p7)
}
 0x74e   :  { %504 = dma.vmem_to_hbm [thread:$0]  %s502_s30, 16, %s764_s4, [#allocation4]   ;;  %v523_v17 = vld [vmem:[%s762_s2 + $0x14] ss:$0 sm:$0xff]  ;;  %vm491_vm10 = vcmask 7168  }
 0x7d3   :  { %v485_v29 = vpop.xlane.xlu1 %484 }
 0x7d4   :  { %v490_v30 = vadd.f32 %v523_v17, %v485_v29 }
 0x7d6   :  { %492 = vst.msk [vmem:[%s763_s3] sm:$0xff] %vm491_vm10, %v490_v30 }
 0x7d7   :  { %633 = dma.done.wait [#allocation4], 16  }
 0x7d8   :  { %634 = vsyncadd [#allocation4], 4294967280 }
 0x7d9   :  { %510 = vsyncpa [#allocation4], 1 }

</bundles_post_ra>
